<compile_context>
chip_gen: v5e
topology: v5e:2x2
jax: 0.10.0
libtpu: 0.0.40
codegen_flags: <defaults>
</compile_context>

<pallas_src>
import jax
import jax.numpy as jnp
from jax.experimental import pallas as pl
from jax.experimental.pallas import tpu as pltpu

EPS = 1e-5


def coordpose_kernel(src_ref, tgt_ref, cb_ref, w_ref, out_ref):
    """Single grid step over the whole (tiny) problem.

    src_ref/tgt_ref : (BK, HW)        VMEM  activations, BK = B*K rows
    cb_ref          : (2*BK+NH, HW)   VMEM  rows 0..BK-1     = conv1 coord+bias
                                             rows BK..2BK-1   = conv2 coord+bias
                                             rows 2BK..       = head bias rows
    w_ref           : (2*BK+NH, BK)   VMEM  rows 0..BK-1     = kron(I_B, w1_kk)
                                             rows BK..2BK-1   = kron(I_B, w2_kk)
                                             rows 2BK..       = kron(I_B, [wf;wm])
    out_ref         : (NH, HW)        VMEM  NH = 3*B; rows 0..2B-1 flow (tanh),
                                             rows 2B..3B-1 mask (sigmoid)
    """
    BK = src_ref.shape[0]
    NH = out_ref.shape[0]
    nf = 2 * (NH // 3)                                   # number of flow rows = 2*B

    diff = tgt_ref[...] - src_ref[...]                   # (BK, HW)

    def mix_inorm_silu(x, w_off, cb_off):
        # 1x1 conv as a block-diagonal (BK, BK) @ (BK, HW) MXU matmul,
        # coord part + bias already folded into cb.
        w = w_ref[w_off:w_off + BK, :]
        y = jnp.dot(w, x, preferred_element_type=jnp.float32) \
            + cb_ref[cb_off:cb_off + BK, :]
        # InstanceNorm2d(affine=False): per-row (= per batch*channel) stats
        # over the spatial (lane) axis -> ONE reduction per stat per layer.
        mean = jnp.mean(y, axis=1, keepdims=True)
        cen = y - mean
        var = jnp.mean(cen * cen, axis=1, keepdims=True)
        xn = cen * jax.lax.rsqrt(var + EPS)
        return xn * jax.nn.sigmoid(xn)                   # SiLU

    h = mix_inorm_silu(diff, 0, 0)                       # conv1 + norm1 + SiLU
    h = mix_inorm_silu(h, BK, BK)                        # conv2 + norm2 + SiLU

    # Fused flow+mask head: (NH, BK) @ (BK, HW) + bias rows.
    wh = w_ref[2 * BK:2 * BK + NH, :]
    z = jnp.dot(wh, h, preferred_element_type=jnp.float32) \
        + cb_ref[2 * BK:2 * BK + NH, :]

    # Rows < nf are flow (tanh), remaining rows are mask (sigmoid).
    row = jax.lax.broadcasted_iota(jnp.int32, z.shape, 0)
    out_ref[...] = jnp.where(row < nf, jnp.tanh(z), jax.nn.sigmoid(z))


def coord_map_cf(H, W):
    """PyTorch get_coord_map, channels-first & spatially flattened: (2, H*W)."""
    r = (jnp.arange(H, dtype=jnp.float32) / max(H - 1, 1)) * 2.0 - 1.0
    c = (jnp.arange(W, dtype=jnp.float32) / max(W - 1, 1)) * 2.0 - 1.0
    rows = jnp.broadcast_to(r[:, None], (H, W)).reshape(1, H * W)
    cols = jnp.broadcast_to(c[None, :], (H, W)).reshape(1, H * W)
    return jnp.concatenate([rows, cols], axis=0)


def coordpose_forward(src_mask, tgt_mask, params):
    """src_mask, tgt_mask: NCHW [B, K, H, W] f32 -> (flow [B,2,H,W], mask [B,1,H,W])."""
    B, K, H, W = src_mask.shape
    HW = H * W
    BK = B * K
    NH = 3 * B               # 2*B flow rows + B mask rows

    # NCHW -> (B*K, HW): pure reshape, channels-first, HW on the lane axis.
    src = src_mask.reshape(BK, HW)
    tgt = tgt_mask.reshape(BK, HW)

    (w1, b1, w2, b2, wm, bm, wf, bf) = params   # conv weights as [Cout, Cin]

    # Batch-invariant coord contributions + biases (tiny XLA ops, done once).
    coord = coord_map_cf(H, W)                               # (2, HW)
    cb1 = jnp.tile(w1[:, K:] @ coord + b1[:, None], (B, 1))  # (BK, HW)
    cb2 = jnp.tile(w2[:, K:] @ coord + b2[:, None], (B, 1))  # (BK, HW)
    head_b = jnp.concatenate([jnp.tile(bf, (B,)), jnp.tile(bm, (B,))])   # (NH,)
    cb = jnp.concatenate(
        [cb1, cb2, jnp.broadcast_to(head_b[:, None], (NH, HW))],
        axis=0).astype(jnp.float32)                          # (2*BK+NH, HW)

    # Block-diagonal channel-mix weights (one tiny VMEM operand).
    eyeB = jnp.eye(B, dtype=jnp.float32)
    w1_bd = jnp.kron(eyeB, w1[:, :K])                        # (BK, BK)
    w2_bd = jnp.kron(eyeB, w2[:, :K])                        # (BK, BK)
    wh_bd = jnp.concatenate(
        [jnp.kron(eyeB, wf), jnp.kron(eyeB, wm)], axis=0)    # (NH, BK)
    wmat = jnp.concatenate([w1_bd, w2_bd, wh_bd], axis=0).astype(jnp.float32)

    out = pl.pallas_call(
        coordpose_kernel,
        out_shape=jax.ShapeDtypeStruct((NH, HW), jnp.float32),
        grid=(1,),
        in_specs=[
            pl.BlockSpec((BK, HW), lambda i: (0, 0)),            # src
            pl.BlockSpec((BK, HW), lambda i: (0, 0)),            # tgt
            pl.BlockSpec((2 * BK + NH, HW), lambda i: (0, 0)),   # coord terms + head bias
            pl.BlockSpec((2 * BK + NH, BK), lambda i: (0, 0)),   # block-diag weights
        ],
        out_specs=pl.BlockSpec((NH, HW), lambda i: (0, 0)),      # fused flow+mask
    )(src, tgt, cb, wmat)

    flow = out[:2 * B].reshape(B, 2, H, W)
    mask = out[2 * B:].reshape(B, 1, H, W)
    return flow, mask


def coordpose_reference(src_mask, tgt_mask, params):
    """Pure-JAX reference of the PyTorch forward (sanity check)."""
    B, K, H, W = src_mask.shape
    (w1, b1, w2, b2, wm, bm, wf, bf) = params
    coord = coord_map_cf(H, W).reshape(2, H, W)
    coord = jnp.broadcast_to(coord[None], (B, 2, H, W))

    def conv1x1(x, w, b):
        return jnp.einsum('bchw,oc->bohw', x, w) + b[None, :, None, None]

    def inorm(x):
        mean = jnp.mean(x, axis=(2, 3), keepdims=True)
        var = jnp.mean((x - mean) ** 2, axis=(2, 3), keepdims=True)
        return (x - mean) * jax.lax.rsqrt(var + EPS)

    def silu(x):
        return x * jax.nn.sigmoid(x)

    diff = tgt_mask - src_mask
    h = silu(inorm(conv1x1(jnp.concatenate([diff, coord], axis=1), w1, b1)))
    h = silu(inorm(conv1x1(jnp.concatenate([h, coord], axis=1), w2, b2)))
    mask = jax.nn.sigmoid(conv1x1(h, wm, bm))
    flow = jnp.tanh(conv1x1(h, wf, bf))
    return flow, mask


def init_params(key, K):
    """Deterministic synthetic weights; conv weights stored as [Cout, Cin]."""
    ks = jax.random.split(key, 8)
    s = 0.3
    w1 = s * jax.random.normal(ks[0], (K, K + 2), jnp.float32)
    b1 = s * jax.random.normal(ks[1], (K,), jnp.float32)
    w2 = s * jax.random.normal(ks[2], (K, K + 2), jnp.float32)
    b2 = s * jax.random.normal(ks[3], (K,), jnp.float32)
    wm = s * jax.random.normal(ks[4], (1, K), jnp.float32)
    bm = s * jax.random.normal(ks[5], (1,), jnp.float32)
    wf = s * jax.random.normal(ks[6], (2, K), jnp.float32)
    bf = s * jax.random.normal(ks[7], (2,), jnp.float32)
    return (w1, b1, w2, b2, wm, bm, wf, bf)


if __name__ == "__main__":
    B, K, H, W = 2, 4, 16, 16   # num_part = 4
    key = jax.random.PRNGKey(0)
    k_src, k_tgt, k_par = jax.random.split(key, 3)

    src_mask = jax.random.uniform(k_src, (B, K, H, W), jnp.float32)
    tgt_mask = jax.random.uniform(k_tgt, (B, K, H, W), jnp.float32)
    params = init_params(k_par, K)

    flow, mask = coordpose_forward(src_mask, tgt_mask, params)
    flow = jax.block_until_ready(flow)
    mask = jax.block_until_ready(mask)

    flow_ref, mask_ref = coordpose_reference(src_mask, tgt_mask, params)
    assert flow.shape == (B, 2, H, W) and mask.shape == (B, 1, H, W)
    assert jnp.allclose(flow, flow_ref, atol=1e-4, rtol=1e-4)
    assert jnp.allclose(mask, mask_ref, atol=1e-4, rtol=1e-4)

    print("KERNEL_OK")
</pallas_src>

<mosaic_0001>
module attributes {stable_mosaic.version = 11 : i64} {
  func.func @coordpose_kernel(%arg0: i32, %arg1: memref<8x256xf32, #tpu.memory_space<vmem>>, %arg2: memref<8x256xf32, #tpu.memory_space<vmem>>, %arg3: memref<22x256xf32, #tpu.memory_space<vmem>>, %arg4: memref<22x8xf32, #tpu.memory_space<vmem>>, %arg5: memref<6x256xf32, #tpu.memory_space<vmem>>) attributes {dimension_semantics = [#tpu.dimension_semantics<arbitrary>], iteration_bounds = array<i64: 1>, scalar_prefetch = 0 : i64, scratch_operands = 0 : i64, tpu.core_type = #tpu.core_type<tc>, window_params = [{pipeline_mode = #tpu.pipeline_mode<synchronous>, transform_indices = @transform_0, window_bounds = array<i64: 8, 256>}, {pipeline_mode = #tpu.pipeline_mode<synchronous>, transform_indices = @transform_1, window_bounds = array<i64: 8, 256>}, {pipeline_mode = #tpu.pipeline_mode<synchronous>, transform_indices = @transform_2, window_bounds = array<i64: 22, 256>}, {pipeline_mode = #tpu.pipeline_mode<synchronous>, transform_indices = @transform_3, window_bounds = array<i64: 22, 8>}, {pipeline_mode = #tpu.pipeline_mode<synchronous>, transform_indices = @transform_4, window_bounds = array<i64: 6, 256>}]} {
    %c0 = arith.constant 0 : index
    %c0_0 = arith.constant 0 : index
    %0 = vector.load %arg2[%c0, %c0_0] : memref<8x256xf32, #tpu.memory_space<vmem>>, vector<8x256xf32>
    %c0_1 = arith.constant 0 : index
    %c0_2 = arith.constant 0 : index
    %1 = vector.load %arg1[%c0_1, %c0_2] : memref<8x256xf32, #tpu.memory_space<vmem>>, vector<8x256xf32>
    %2 = arith.subf %0, %1 : vector<8x256xf32>
    %c0_3 = arith.constant 0 : index
    %c0_4 = arith.constant 0 : index
    %3 = vector.load %arg4[%c0_3, %c0_4] : memref<22x8xf32, #tpu.memory_space<vmem>>, vector<8x8xf32>
    %cst = arith.constant dense<0.000000e+00> : vector<8x256xf32>
    %4 = tpu.matmul %3, %2, %cst {dimension_numbers = #tpu.dot_dimension_numbers<[1], [0], [0], [1], [0, 0, 1, 1], [], []>} : vector<8x8xf32>, vector<8x256xf32>, vector<8x256xf32> -> vector<8x256xf32>
    %c0_5 = arith.constant 0 : index
    %c0_6 = arith.constant 0 : index
    %5 = vector.load %arg3[%c0_5, %c0_6] : memref<22x256xf32, #tpu.memory_space<vmem>>, vector<8x256xf32>
    %6 = arith.addf %4, %5 : vector<8x256xf32>
    %cst_7 = arith.constant dense<0.000000e+00> : vector<8xf32>
    %7 = vector.multi_reduction <add>, %6, %cst_7 [1] : vector<8x256xf32> to vector<8xf32>
    %8 = vector.shape_cast %7 : vector<8xf32> to vector<8x1xf32>
    %cst_8 = arith.constant 2.560000e+02 : f32
    %9 = vector.broadcast %cst_8 : f32 to vector<8x1xf32>
    %10 = arith.divf %8, %9 : vector<8x1xf32>
    %11 = vector.broadcast %10 : vector<8x1xf32> to vector<8x256xf32>
    %12 = arith.subf %6, %11 : vector<8x256xf32>
    %13 = arith.mulf %12, %12 : vector<8x256xf32>
    %cst_9 = arith.constant dense<0.000000e+00> : vector<8xf32>
    %14 = vector.multi_reduction <add>, %13, %cst_9 [1] : vector<8x256xf32> to vector<8xf32>
    %15 = vector.shape_cast %14 : vector<8xf32> to vector<8x1xf32>
    %cst_10 = arith.constant 2.560000e+02 : f32
    %16 = vector.broadcast %cst_10 : f32 to vector<8x1xf32>
    %17 = arith.divf %15, %16 : vector<8x1xf32>
    %cst_11 = arith.constant 9.99999974E-6 : f32
    %18 = vector.broadcast %cst_11 : f32 to vector<8x1xf32>
    %19 = arith.addf %17, %18 : vector<8x1xf32>
    %20 = math.rsqrt %19 : vector<8x1xf32>
    %21 = vector.broadcast %20 : vector<8x1xf32> to vector<8x256xf32>
    %22 = arith.mulf %12, %21 : vector<8x256xf32>
    %23 = arith.negf %22 : vector<8x256xf32>
    %24 = math.exp %23 : vector<8x256xf32>
    %cst_12 = arith.constant 1.000000e+00 : f32
    %25 = vector.broadcast %cst_12 : f32 to vector<8x256xf32>
    %26 = arith.addf %25, %24 : vector<8x256xf32>
    %27 = arith.divf %25, %26 : vector<8x256xf32>
    %28 = arith.mulf %22, %27 : vector<8x256xf32>
    %c8 = arith.constant 8 : index
    %c0_13 = arith.constant 0 : index
    %29 = vector.load %arg4[%c8, %c0_13] : memref<22x8xf32, #tpu.memory_space<vmem>>, vector<8x8xf32>
    %cst_14 = arith.constant dense<0.000000e+00> : vector<8x256xf32>
    %30 = tpu.matmul %29, %28, %cst_14 {dimension_numbers = #tpu.dot_dimension_numbers<[1], [0], [0], [1], [0, 0, 1, 1], [], []>} : vector<8x8xf32>, vector<8x256xf32>, vector<8x256xf32> -> vector<8x256xf32>
    %c8_15 = arith.constant 8 : index
    %c0_16 = arith.constant 0 : index
    %31 = vector.load %arg3[%c8_15, %c0_16] : memref<22x256xf32, #tpu.memory_space<vmem>>, vector<8x256xf32>
    %32 = arith.addf %30, %31 : vector<8x256xf32>
    %cst_17 = arith.constant dense<0.000000e+00> : vector<8xf32>
    %33 = vector.multi_reduction <add>, %32, %cst_17 [1] : vector<8x256xf32> to vector<8xf32>
    %34 = vector.shape_cast %33 : vector<8xf32> to vector<8x1xf32>
    %cst_18 = arith.constant 2.560000e+02 : f32
    %35 = vector.broadcast %cst_18 : f32 to vector<8x1xf32>
    %36 = arith.divf %34, %35 : vector<8x1xf32>
    %37 = vector.broadcast %36 : vector<8x1xf32> to vector<8x256xf32>
    %38 = arith.subf %32, %37 : vector<8x256xf32>
    %39 = arith.mulf %38, %38 : vector<8x256xf32>
    %cst_19 = arith.constant dense<0.000000e+00> : vector<8xf32>
    %40 = vector.multi_reduction <add>, %39, %cst_19 [1] : vector<8x256xf32> to vector<8xf32>
    %41 = vector.shape_cast %40 : vector<8xf32> to vector<8x1xf32>
    %cst_20 = arith.constant 2.560000e+02 : f32
    %42 = vector.broadcast %cst_20 : f32 to vector<8x1xf32>
    %43 = arith.divf %41, %42 : vector<8x1xf32>
    %cst_21 = arith.constant 9.99999974E-6 : f32
    %44 = vector.broadcast %cst_21 : f32 to vector<8x1xf32>
    %45 = arith.addf %43, %44 : vector<8x1xf32>
    %46 = math.rsqrt %45 : vector<8x1xf32>
    %47 = vector.broadcast %46 : vector<8x1xf32> to vector<8x256xf32>
    %48 = arith.mulf %38, %47 : vector<8x256xf32>
    %49 = arith.negf %48 : vector<8x256xf32>
    %50 = math.exp %49 : vector<8x256xf32>
    %cst_22 = arith.constant 1.000000e+00 : f32
    %51 = vector.broadcast %cst_22 : f32 to vector<8x256xf32>
    %52 = arith.addf %51, %50 : vector<8x256xf32>
    %53 = arith.divf %51, %52 : vector<8x256xf32>
    %54 = arith.mulf %48, %53 : vector<8x256xf32>
    %c16 = arith.constant 16 : index
    %c0_23 = arith.constant 0 : index
    %55 = vector.load %arg4[%c16, %c0_23] : memref<22x8xf32, #tpu.memory_space<vmem>>, vector<6x8xf32>
    %cst_24 = arith.constant dense<0.000000e+00> : vector<6x256xf32>
    %56 = tpu.matmul %55, %54, %cst_24 {dimension_numbers = #tpu.dot_dimension_numbers<[1], [0], [0], [1], [0, 0, 1, 1], [], []>} : vector<6x8xf32>, vector<8x256xf32>, vector<6x256xf32> -> vector<6x256xf32>
    %c16_25 = arith.constant 16 : index
    %c0_26 = arith.constant 0 : index
    %57 = vector.load %arg3[%c16_25, %c0_26] : memref<22x256xf32, #tpu.memory_space<vmem>>, vector<6x256xf32>
    %58 = arith.addf %56, %57 : vector<6x256xf32>
    %59 = tpu.iota {dimensions = array<i32: 0>} : vector<6x256xi32>
    %c4_i32 = arith.constant 4 : i32
    %60 = vector.broadcast %c4_i32 : i32 to vector<6x256xi32>
    %61 = arith.cmpi slt, %59, %60 : vector<6x256xi32>
    %62 = math.tanh %58 : vector<6x256xf32>
    %63 = arith.negf %58 : vector<6x256xf32>
    %64 = math.exp %63 : vector<6x256xf32>
    %cst_27 = arith.constant 1.000000e+00 : f32
    %65 = vector.broadcast %cst_27 : f32 to vector<6x256xf32>
    %66 = arith.addf %65, %64 : vector<6x256xf32>
    %67 = arith.divf %65, %66 : vector<6x256xf32>
    %68 = arith.select %61, %62, %67 : vector<6x256xi1>, vector<6x256xf32>
    %c0_28 = arith.constant 0 : index
    %c0_29 = arith.constant 0 : index
    %69 = vector.load %arg5[%c0_28, %c0_29] : memref<6x256xf32, #tpu.memory_space<vmem>>, vector<6x256xf32>
    tpu.vector_store %arg5[%c0_28, %c0_29], %68 {strides = array<i32>} : memref<6x256xf32, #tpu.memory_space<vmem>>, vector<6x256xf32>,
    return
  }
  func.func @transform_0(%arg0: i32) -> (i32, i32) {
    %c0_i32 = arith.constant 0 : i32
    %c0_i32_0 = arith.constant 0 : i32
    %c0_i32_1 = arith.constant 0 : i32
    return %c0_i32, %c0_i32_0 : i32, i32
  }
  func.func @transform_1(%arg0: i32) -> (i32, i32) {
    %c0_i32 = arith.constant 0 : i32
    %c0_i32_0 = arith.constant 0 : i32
    %c0_i32_1 = arith.constant 0 : i32
    return %c0_i32, %c0_i32_0 : i32, i32
  }
  func.func @transform_2(%arg0: i32) -> (i32, i32) {
    %c0_i32 = arith.constant 0 : i32
    %c0_i32_0 = arith.constant 0 : i32
    %c0_i32_1 = arith.constant 0 : i32
    return %c0_i32, %c0_i32_0 : i32, i32
  }
  func.func @transform_3(%arg0: i32) -> (i32, i32) {
    %c0_i32 = arith.constant 0 : i32
    %c0_i32_0 = arith.constant 0 : i32
    %c0_i32_1 = arith.constant 0 : i32
    return %c0_i32, %c0_i32_0 : i32, i32
  }
  func.func @transform_4(%arg0: i32) -> (i32, i32) {
    %c0_i32 = arith.constant 0 : i32
    %c0_i32_0 = arith.constant 0 : i32
    %c0_i32_1 = arith.constant 0 : i32
    return %c0_i32, %c0_i32_0 : i32, i32
  }
}

</mosaic_0001>

<bundles_post_ra>
// kernel: tpu_custom_call.1
= control target key start
LH: loop header
LB: loop body
LE: loop exit
PB: predicated region body
PF: predicated region fallthrough
CT: control target
= control target key end

     0   :  { %9 = vsyncpa [#allocation3], 0  ;;  %s555_s0 = inlined_call_operand.vmem [shape: f32[8,256], index: 0, kind: input, shape index: {}]   ;;  %s556_s1 = inlined_call_operand.vmem [shape: f32[8,256], index: 1, kind: input, shape index: {}]   ;;  %s557_s2 = inlined_call_operand.hbm [shape: f32[22,256], index: 2, kind: input, shape index: {}]   ;;  %s558_s3 = inlined_call_operand.vmem [shape: f32[22,8], index: 3, kind: input, shape index: {}]   ;;  %s559_s4 = inlined_call_operand.hbm [shape: f32[6,256], index: 4, kind: output, shape index: {}]  }
   0x1   :  { %10 = vsyncpa [#allocation4], 0  ;;  %s19_s17 = sshll.u32 %s557_s2, 4  ;;  %s483_s18 = smov [#allocation2]   ;;  %s20_s17 = int_to_ptr.hbm [resolvable:$true] %s19_s17 }
   0x2   :  { %s21_s19 = sshll.u32 %s483_s18, 4  ;;  %s484_s20 = smov 256   ;;  %s22_s19 = int_to_ptr.vmem [resolvable:$true] %s21_s19 }
   0x3   :  { %s485_s21 = smov 16  }
   0x4   :  { %27 = dma.hbm_to_vmem [thread:$0]  %s20_s17, 768, %s22_s19, [#allocation3], %s484_s20, %s484_s20, %s485_s21  }
   0x5   :  { %479 = dma.done.wait [#allocation3], 768  }
   0x6   :  { %480 = vsyncadd [#allocation3], 4294966528  ;;  %v34_v0 = vld [vmem:[%s556_s1] sm:$0xff]  ;;  %v35_v2 = vld [vmem:[%s556_s1 + $0x8] sm:$0xff]  ;;  %vm43_vm0 = vcmask 64512   ;;  %v486_v14 = vmov 256.0  }
   0x7   :  { %v36_v1 = vld [vmem:[%s555_s0] sm:$0xff]  ;;  %v37_v4 = vld [vmem:[%s555_s0 + $0x8] sm:$0xff]  ;;  %397 = vrcp.f32 %v486_v14  ;;  %s370_s10 = sshll.u32 %s559_s4, 4  ;;  %s371_s10 = int_to_ptr.hbm [resolvable:$true] %s370_s10 }
   0x8   :  { %v38_v3 = vsub.f32 %v34_v0, %v36_v1  ;;  %v40_v5 = vld [vmem:[%s558_s3] sm:$0xff]  ;;  %v39_v6 = vsub.f32 %v35_v2, %v37_v4  ;;  %v42_v8 = vld [vmem:[#allocation2 + $0x8] sm:$0xff] }
   0x9   :  { %v41_v7 = vld [vmem:[#allocation2] sm:$0xff] }
   0xa   :  { %62 = vmatpush.msra.mxu0 %v38_v3  ;;  %82 = vmatpush.msra.mxu1 %v39_v6  ;;  %v159_v3 = vld [vmem:[%s558_s3 + $0x8] sm:$0xff]  ;;  %v161_v6 = vld [vmem:[#allocation2 + $0x18] sm:$0xff] }
   0xb   :  { %380 = vmatmul.msk.f32.vlgmr.msra.gmra.mxu0 %vm43_vm0, %v40_v5  ;;  %381 = vmatmul.msk.f32.vlgmr.msra.gmra.mxu1 %vm43_vm0, %v40_v5  ;;  %v160_v5 = vld [vmem:[#allocation2 + $0x10] sm:$0xff] }
   0xd   :  { %v398_v15 = vpop.eup %397 }
   0xe   :  { %v91_v16 = vmul.f32 256.0, %v398_v15  ;;  %vm95_vm1 = vweird.f32 %v398_v15 }
  0x10   :  { %v92_v17 = vsub.f32 1.0, %v91_v16 }
  0x12   :  { %v93_v18 = vmul.f32 %v398_v15, %v92_v17 }
  0x14   :  { %v94_v19 = vadd.f32 %v398_v15, %v93_v18 }
  0x16   :  { %v533_v20 = vsel %vm95_vm1, %v398_v15, %v94_v19 }
  0x88   :  { %v64_v9 = vpop.f32.mrf.mxu0  ;;  %v84_v11 = vpop.f32.mrf.mxu1 }
  0x89   :  { %v65_v10 = vadd.f32 %v64_v9, %v41_v7  ;;  %v85_v12 = vadd.f32 %v84_v11, %v42_v8 }
  0x8b   :  { %v87_v13 = vadd.f32 %v85_v12, %v65_v10 }
  0x8d   :  { %88 = vadd.xlane.f32.xlu0 %v87_v13 }
 0x100   :  { %v89_v21 = vpop.xlane.xlu0 %88 }
 0x101   :  { %v97_v22 = vmul.f32 %v533_v20, %v89_v21 }
 0x103   :  { %v98_v23 = vsub.f32 %v65_v10, %v97_v22  ;;  %v99_v24 = vsub.f32 %v85_v12, %v97_v22 }
 0x105   :  { %v100_v25 = vmul.f32 %v98_v23, %v98_v23  ;;  %v101_v26 = vmul.f32 %v99_v24, %v99_v24 }
 0x107   :  { %v102_v27 = vadd.f32 %v101_v26, %v100_v25 }
 0x109   :  { %103 = vadd.xlane.f32.xlu0 %v102_v27 }
 0x17c   :  { %v104_v28 = vpop.xlane.xlu0 %103 }
 0x17d   :  { %v105_v29 = vmul.f32 %v104_v28, %v533_v20 }
 0x17f   :  { %v106_v30 = vadd.f32 1e-05, %v105_v29 }
 0x181   :  { %399 = vrsqrt.f32 %v106_v30  ;;  %vm113_vm3 = vweird.f32 %v106_v30 }
 0x187   :  { %v400_v31 = vpop.eup %399 }
 0x188   :  { %v108_v32 = vmul.f32 %v400_v31, %v106_v30  ;;  %vm114_vm2 = vweird.f32 %v400_v31 }
 0x189   :  { %vm115_vm4 = vmor %vm113_vm3, %vm114_vm2 }
 0x18a   :  { %v109_v33 = vmul.f32 %v400_v31, %v108_v32 }
 0x18c   :  { %v110_v34 = vmul.f32 0.5, %v109_v33 }
 0x18e   :  { %v111_v35 = vsub.f32 1.5, %v110_v34 }
 0x190   :  { %v112_v36 = vmul.f32 %v400_v31, %v111_v35 }
 0x192   :  { %v116_v37 = vsel %vm115_vm4, %v400_v31, %v112_v36 }
 0x193   :  { %v117_v38 = vmul.f32 %v116_v37, %v98_v23  ;;  %v118_v39 = vmul.f32 %v116_v37, %v99_v24 }
 0x195   :  { %v382_v40 = vmul.f32 -1.442695, %v117_v38  ;;  %v383_v41 = vmul.f32 -1.442695, %v118_v39 }
 0x197   :  { %401 = vpow2.f32 %v382_v40 }
 0x198   :  { %403 = vpow2.f32 %v383_v41 }
 0x19d   :  { %v402_v42 = vpop.eup %401 }
 0x19e   :  { %v404_v43 = vpop.eup %403  ;;  %v125_v44 = vadd.f32 1.0, %v402_v42 }
 0x19f   :  { %v126_v45 = vadd.f32 1.0, %v404_v43 }
 0x1a0   :  { %405 = vrcp.f32 %v125_v44  ;;  %v138_v51 = vand.u32 2147483648, %v125_v44  ;;  %v136_v54 = vand.u32 2147483647, %v125_v44  ;;  %vm132_vm7 = vweird.f32 %v125_v44 }
 0x1a1   :  { %407 = vrcp.f32 %v126_v45  ;;  %v153_v55 = vand.u32 2147483648, %v126_v45  ;;  %v151_v57 = vand.u32 2147483647, %v126_v45  ;;  %vm147_vm9 = vweird.f32 %v126_v45 }
 0x1a2   :  { %v139_v59 = vor.u32 1.1754944e-38, %v138_v51  ;;  %vm137_vm10 = vcmp.eq.f32.partialorder %v136_v54, 8.507059e+37 }
 0x1a3   :  { %v154_v62 = vor.u32 1.1754944e-38, %v153_v55  ;;  %vm152_vm12 = vcmp.eq.f32.partialorder %v151_v57, 8.507059e+37 }
 0x1a6   :  { %v406_v46 = vpop.eup %405 }
 0x1a7   :  { %v408_v47 = vpop.eup %407  ;;  %v128_v48 = vmul.f32 %v406_v46, %v125_v44  ;;  %vm133_vm5 = vweird.f32 %v406_v46 }
 0x1a8   :  { %v143_v49 = vmul.f32 %v408_v47, %v126_v45  ;;  %vm148_vm6 = vweird.f32 %v408_v47  ;;  %vm134_vm8 = vmor %vm132_vm7, %vm133_vm5 }
 0x1a9   :  { %v129_v50 = vsub.f32 1.0, %v128_v48  ;;  %vm149_vm11 = vmor %vm147_vm9, %vm148_vm6 }
 0x1aa   :  { %v144_v52 = vsub.f32 1.0, %v143_v49 }
 0x1ab   :  { %v130_v53 = vmul.f32 %v406_v46, %v129_v50 }
 0x1ac   :  { %v145_v56 = vmul.f32 %v408_v47, %v144_v52 }
 0x1ad   :  { %v131_v58 = vadd.f32 %v406_v46, %v130_v53 }
 0x1ae   :  { %v146_v60 = vadd.f32 %v408_v47, %v145_v56 }
 0x1af   :  { %v135_v61 = vsel %vm134_vm8, %v406_v46, %v131_v58  ;;  %v270_v58 = vld [vmem:[%s558_s3 + $0x10] sm:$0x3f]  ;;  %s487_s3 = smov [#allocation5]  }
 0x1b0   :  { %v140_v63 = vsel %vm137_vm10, %v139_v59, %v135_v61  ;;  %v150_v0 = vsel %vm149_vm11, %v408_v47, %v146_v60  ;;  %v271_v60 = vld [vmem:[#allocation2 + $0x20] sm:$0x3f]  ;;  %v272_v61 = vld [vmem:[#allocation2 + $0x28] sm:$0x3f]  ;;  %s368_s7 = sshll.u32 %s487_s3, 4  ;;  %s369_s7 = int_to_ptr.vmem [resolvable:$true] %s368_s7 }
 0x1b1   :  { %v157_v1 = vmul.f32 %v140_v63, %v117_v38  ;;  %v155_v2 = vsel %vm152_vm12, %v154_v62, %v150_v0 }
 0x1b2   :  { %v158_v4 = vmul.f32 %v155_v2, %v118_v39 }
 0x1b3   :  { %180 = vmatpush.msra.mxu2 %v157_v1 }
 0x1b4   :  { %200 = vmatpush.msra.mxu3 %v158_v4  ;;  %384 = vmatmul.msk.f32.vlgmr.msra.gmra.mxu2 %vm43_vm0, %v159_v3 }
 0x1b5   :  { %385 = vmatmul.msk.f32.vlgmr.msra.gmra.mxu3 %vm43_vm0, %v159_v3 }
 0x237   :  { %v182_v7 = vpop.f32.mrf.mxu2 }
 0x238   :  { %v183_v8 = vadd.f32 %v182_v7, %v160_v5  ;;  %v202_v9 = vpop.f32.mrf.mxu3 }
 0x239   :  { %v203_v10 = vadd.f32 %v202_v9, %v161_v6  ;;  %v316_v9 = vlaneseq }
 0x23b   :  { %v205_v11 = vadd.f32 %v203_v10, %v183_v8 }
 0x23d   :  { %206 = vadd.xlane.f32.xlu1 %v205_v11 }
 0x2b0   :  { %v207_v12 = vpop.xlane.xlu1 %206 }
 0x2b1   :  { %v208_v13 = vmul.f32 %v207_v12, %v533_v20 }
 0x2b3   :  { %v209_v14 = vsub.f32 %v183_v8, %v208_v13  ;;  %v210_v15 = vsub.f32 %v203_v10, %v208_v13 }
 0x2b5   :  { %v211_v16 = vmul.f32 %v209_v14, %v209_v14  ;;  %v212_v17 = vmul.f32 %v210_v15, %v210_v15 }
 0x2b7   :  { %v213_v18 = vadd.f32 %v212_v17, %v211_v16 }
 0x2b9   :  { %214 = vadd.xlane.f32.xlu1 %v213_v18 }
 0x32c   :  { %v215_v19 = vpop.xlane.xlu1 %214 }
 0x32d   :  { %v216_v21 = vmul.f32 %v215_v19, %v533_v20 }
 0x32f   :  { %v217_v22 = vadd.f32 1e-05, %v216_v21 }
 0x331   :  { %409 = vrsqrt.f32 %v217_v22  ;;  %vm224_vm14 = vweird.f32 %v217_v22 }
 0x337   :  { %v410_v23 = vpop.eup %409 }
 0x338   :  { %v219_v24 = vmul.f32 %v410_v23, %v217_v22  ;;  %vm225_vm13 = vweird.f32 %v410_v23 }
 0x339   :  { %vm226_vm15 = vmor %vm224_vm14, %vm225_vm13 }
 0x33a   :  { %v220_v25 = vmul.f32 %v410_v23, %v219_v24 }
 0x33c   :  { %v221_v26 = vmul.f32 0.5, %v220_v25 }
 0x33e   :  { %v222_v27 = vsub.f32 1.5, %v221_v26 }
 0x340   :  { %v223_v28 = vmul.f32 %v410_v23, %v222_v27 }
 0x342   :  { %v227_v29 = vsel %vm226_vm15, %v410_v23, %v223_v28 }
 0x343   :  { %v228_v30 = vmul.f32 %v227_v29, %v209_v14  ;;  %v229_v31 = vmul.f32 %v227_v29, %v210_v15  ;;  %v317_v15 = vshrl.u32 %v316_v9, 7 }
 0x345   :  { %v386_v32 = vmul.f32 -1.442695, %v228_v30  ;;  %v387_v33 = vmul.f32 -1.442695, %v229_v31  ;;  %vm318_vm11 = vcmp.lt.s32.totalorder %v317_v15, 4 }
 0x347   :  { %411 = vpow2.f32 %v386_v32 }
 0x348   :  { %413 = vpow2.f32 %v387_v33 }
 0x34d   :  { %v412_v34 = vpop.eup %411 }
 0x34e   :  { %v414_v20 = vpop.eup %413  ;;  %v236_v35 = vadd.f32 1.0, %v412_v34 }
 0x34f   :  { %v237_v36 = vadd.f32 1.0, %v414_v20 }
 0x350   :  { %415 = vrcp.f32 %v236_v35  ;;  %v249_v42 = vand.u32 2147483648, %v236_v35  ;;  %v247_v45 = vand.u32 2147483647, %v236_v35  ;;  %vm243_vm3 = vweird.f32 %v236_v35 }
 0x351   :  { %417 = vrcp.f32 %v237_v36  ;;  %v264_v46 = vand.u32 2147483648, %v237_v36  ;;  %v262_v48 = vand.u32 2147483647, %v237_v36  ;;  %vm258_vm5 = vweird.f32 %v237_v36 }
 0x352   :  { %v250_v50 = vor.u32 1.1754944e-38, %v249_v42  ;;  %vm248_vm6 = vcmp.eq.f32.partialorder %v247_v45, 8.507059e+37 }
 0x353   :  { %v265_v53 = vor.u32 1.1754944e-38, %v264_v46  ;;  %vm263_vm8 = vcmp.eq.f32.partialorder %v262_v48, 8.507059e+37 }
 0x356   :  { %v416_v37 = vpop.eup %415 }
 0x357   :  { %v418_v38 = vpop.eup %417  ;;  %v239_v39 = vmul.f32 %v416_v37, %v236_v35  ;;  %vm244_vm1 = vweird.f32 %v416_v37 }
 0x358   :  { %v254_v40 = vmul.f32 %v418_v38, %v237_v36  ;;  %vm259_vm2 = vweird.f32 %v418_v38  ;;  %vm245_vm4 = vmor %vm243_vm3, %vm244_vm1 }
 0x359   :  { %v240_v41 = vsub.f32 1.0, %v239_v39  ;;  %vm260_vm7 = vmor %vm258_vm5, %vm259_vm2 }
 0x35a   :  { %v255_v43 = vsub.f32 1.0, %v254_v40 }
 0x35b   :  { %v241_v44 = vmul.f32 %v416_v37, %v240_v41 }
 0x35c   :  { %v256_v47 = vmul.f32 %v418_v38, %v255_v43 }
 0x35d   :  { %v242_v49 = vadd.f32 %v416_v37, %v241_v44 }
 0x35e   :  { %v257_v51 = vadd.f32 %v418_v38, %v256_v47 }
 0x35f   :  { %v246_v52 = vsel %vm245_vm4, %v416_v37, %v242_v49 }
 0x360   :  { %v251_v54 = vsel %vm248_vm6, %v250_v50, %v246_v52  ;;  %v261_v55 = vsel %vm260_vm7, %v418_v38, %v257_v51 }
 0x361   :  { %v268_v56 = vmul.f32 %v251_v54, %v228_v30  ;;  %v266_v57 = vsel %vm263_vm8, %v265_v53, %v261_v55 }
 0x362   :  { %v269_v59 = vmul.f32 %v266_v57, %v229_v31 }
 0x363   :  { %291 = vmatpush.msrb.mxu0 %v268_v56 }
 0x364   :  { %311 = vmatpush.msrb.mxu1 %v269_v59  ;;  %388 = vmatmul.msk.f32.vlgmr.msrb.gmra.mxu0 %vm43_vm0, %v270_v58 }
 0x365   :  { %389 = vmatmul.msk.f32.vlgmr.msrb.gmra.mxu1 %vm43_vm0, %v270_v58 }
 0x3e1   :  { %v293_v62 = vpop.f32.mrf.mxu0 }
 0x3e2   :  { %v294_v63 = vadd.f32 %v293_v62, %v271_v60  ;;  %v313_v0 = vpop.f32.mrf.mxu1 }
 0x3e3   :  { %v314_v1 = vadd.f32 %v313_v0, %v272_v61 }
 0x3e4   :  { %v390_v2 = vmul.f32 -1.442695, %v294_v63 }
 0x3e5   :  { %v391_v3 = vmul.f32 -1.442695, %v314_v1 }
 0x3e6   :  { %419 = vpow2.f32 %v390_v2 }
 0x3e7   :  { %421 = vpow2.f32 %v391_v3 }
 0x3ec   :  { %v420_v4 = vpop.eup %419 }
 0x3ed   :  { %v422_v5 = vpop.eup %421  ;;  %v327_v6 = vadd.f32 1.0, %v420_v4 }
 0x3ee   :  { %v328_v7 = vadd.f32 1.0, %v422_v5 }
 0x3ef   :  { %423 = vrcp.f32 %v327_v6  ;;  %v340_v16 = vand.u32 2147483648, %v327_v6  ;;  %v338_v18 = vand.u32 2147483647, %v327_v6  ;;  %vm334_vm10 = vweird.f32 %v327_v6 }
 0x3f0   :  { %425 = vrcp.f32 %v328_v7  ;;  %v355_v19 = vand.u32 2147483648, %v328_v7  ;;  %v353_v22 = vand.u32 2147483647, %v328_v7  ;;  %vm349_vm13 = vweird.f32 %v328_v7 }
 0x3f1   :  { %427 = vtanh.f32 %v294_v63  ;;  %v341_v24 = vor.u32 1.1754944e-38, %v340_v16  ;;  %vm339_vm14 = vcmp.eq.f32.partialorder %v338_v18, 8.507059e+37 }
 0x3f2   :  { %429 = vtanh.f32 %v314_v1  ;;  %v356_v28 = vor.u32 1.1754944e-38, %v355_v19  ;;  %vm354_vm1 = vcmp.eq.f32.partialorder %v353_v22, 8.507059e+37 }
 0x3f5   :  { %v424_v8 = vpop.eup %423 }
 0x3f6   :  { %v426_v10 = vpop.eup %425  ;;  %v330_v11 = vmul.f32 %v424_v8, %v327_v6  ;;  %vm335_vm0 = vweird.f32 %v424_v8 }
 0x3f7   :  { %v345_v12 = vmul.f32 %v426_v10, %v328_v7  ;;  %vm350_vm9 = vweird.f32 %v426_v10  ;;  %vm336_vm12 = vmor %vm334_vm10, %vm335_vm0  ;;  %v428_v26 = vpop.eup %427 }
 0x3f8   :  { %v331_v13 = vsub.f32 1.0, %v330_v11  ;;  %vm351_vm15 = vmor %vm349_vm13, %vm350_vm9  ;;  %v430_v29 = vpop.eup %429 }
 0x3f9   :  { %v346_v14 = vsub.f32 1.0, %v345_v12 }
 0x3fa   :  { %v332_v17 = vmul.f32 %v424_v8, %v331_v13 }
 0x3fb   :  { %v347_v21 = vmul.f32 %v426_v10, %v346_v14 }
 0x3fc   :  { %v333_v23 = vadd.f32 %v424_v8, %v332_v17 }
 0x3fd   :  { %v348_v25 = vadd.f32 %v426_v10, %v347_v21 }
 0x3fe   :  { %v337_v27 = vsel %vm336_vm12, %v424_v8, %v333_v23 }
 0x3ff   :  { %v342_v30 = vsel %vm339_vm14, %v341_v24, %v337_v27  ;;  %v352_v31 = vsel %vm351_vm15, %v426_v10, %v348_v25 }
 0x400   :  { %v357_v32 = vsel %vm354_vm1, %v356_v28, %v352_v31  ;;  %v359_v33 = vsel %vm318_vm11, %v428_v26, %v342_v30 }
 0x401   :  { %v360_v34 = vsel %vm318_vm11, %v430_v29, %v357_v32  ;;  %361 = vst [vmem:[#allocation5] sm:$0x3f] %v359_v33 }
 0x402   :  { %362 = vst [vmem:[#allocation5 + $0x8] sm:$0x3f] %v360_v34 }
 0x403   :  { %373 = dma.vmem_to_hbm [thread:$0]  %s369_s7, 256, %s371_s10, [#allocation4]  }
 0x404   :  { %481 = dma.done.wait [#allocation4], 256  }
 0x405   :  { %482 = vsyncadd [#allocation4], 4294967040 }
 0x406   :  { %378 = vsyncpa [#allocation3], 1 }
 0x407   :  { %379 = vsyncpa [#allocation4], 1 }

</bundles_post_ra>
